<compile_context>
chip_gen: v5e
topology: v5e:2x2
jax: 0.10.0
libtpu: 0.0.40
codegen_flags: <defaults>
</compile_context>

<pallas_src>
import jax
import jax.numpy as jnp
import numpy as np
from jax.experimental import pallas as pl
from jax.experimental.pallas import tpu as pltpu


def _round_up(x, m):
    return (x + m - 1) // m * m


def _num_tensorcores_per_chip():
    """Best-effort TC count per chip (v7x/v4/v5p expose 2, v5e/v6e expose 1)."""
    try:
        kind = jax.devices()[0].device_kind.lower()
    except Exception:
        return 1
    return 2 if any(t in kind for t in ("v7", "7x", "v4", "v5p")) else 1


def _frame_nn_skip_kernel(
    x_ref, wl_ref,
    w1x_ref, w1w_ref, b1_ref,
    w2x_ref, w2w_ref, b2_ref,
    w3x_ref, w3w_ref, b3_ref,
    w4x_ref, w4w_ref, b4_ref,
    o_ref,
):
    cdt = w1x_ref.dtype  # compute dtype for MXU operands (bf16 by default)

    # Cast activations in-kernel (inputs are read in their HBM dtype; this
    # avoids a separate wrapper-side astype pass over the whole array).
    x = x_ref[...].astype(cdt)
    wl = wl_ref[...].astype(cdt)

    def layer(h, wx_ref, ww_ref, b_ref, relu):
        # x-path + weak-label skip-path + bias, all accumulated in f32.
        acc = jnp.dot(h, wx_ref[...], preferred_element_type=jnp.float32)
        acc = acc + jnp.dot(wl, ww_ref[...],
                            preferred_element_type=jnp.float32)
        acc = acc + b_ref[...]          # (1, dout) f32 broadcast over rows
        if relu:
            acc = jnp.maximum(acc, 0.0)  # dropout = identity in eval
        return acc

    h = layer(x, w1x_ref, w1w_ref, b1_ref, relu=True).astype(cdt)   # -> 128
    h = layer(h, w2x_ref, w2w_ref, b2_ref, relu=True).astype(cdt)   # -> 64
    h = layer(h, w3x_ref, w3w_ref, b3_ref, relu=True).astype(cdt)   # -> 32
    out = layer(h, w4x_ref, w4w_ref, b4_ref, relu=False)            # -> out
    o_ref[...] = out.astype(o_ref.dtype)


def frame_nn_skip_forward(features, weak_labels, params, *,
                          tile_rows=2048, compute_dtype=jnp.bfloat16):
    """features: (B, T, F), weak_labels: (B, T, WL). Returns (B, T, out_dim)."""
    B, T, F = features.shape
    _, _, WL = weak_labels.shape
    out_dim = params["w4x"].shape[1]
    out_dtype = features.dtype
    cdt = compute_dtype

    # ---- row tiling --------------------------------------------------------
    N = B * T
    tm = min(_round_up(int(tile_rows), 8), _round_up(N, 8))
    n_cores = _num_tensorcores_per_chip()
    if n_cores > 1:
        # Multi-TC chips (v7x): aim for >= 2 grid steps per core so each core
        # can overlap DMA with compute, but never split below 512 rows/step.
        target_steps = 2 * n_cores
        while pl.cdiv(N, tm) < target_steps and tm > 512:
            tm = max(512, _round_up(pl.cdiv(tm, 2), 8))
    grid = (pl.cdiv(N, tm),)

    # ---- inputs: reshape only (free); no pad / cast / concat HBM copies ----
    # Ragged tails are handled by Pallas block masking on the cdiv grid.
    x2d = features.reshape(N, F)
    wl2d = weak_labels.reshape(N, WL)

    # ---- resident weights (tiny; pre-cast once in the wrapper) -------------
    wx = [params[f"w{i}x"].astype(cdt) for i in range(1, 5)]
    ww = [params[f"w{i}w"].astype(cdt) for i in range(1, 5)]
    bs = [params[f"b{i}"].astype(jnp.float32) for i in range(1, 5)]
    weight_args = []
    for i in range(4):
        weight_args += [wx[i], ww[i], bs[i]]

    def full_spec(arr):
        nd = arr.ndim
        return pl.BlockSpec(arr.shape, lambda i, _nd=nd: (0,) * _nd)

    in_specs = [
        pl.BlockSpec((tm, F), lambda i: (i, 0)),
        pl.BlockSpec((tm, WL), lambda i: (i, 0)),
    ] + [full_spec(a) for a in weight_args]

    # 48 MiB scoped VMEM on 1-TC chips (128 MiB physical); keep the 32 MiB
    # default on v7x (64 MiB physical per TC).
    vmem_cap = (48 if n_cores == 1 else 32) * 1024 * 1024

    out2d = pl.pallas_call(
        _frame_nn_skip_kernel,
        out_shape=jax.ShapeDtypeStruct((N, out_dim), out_dtype),
        grid_spec=pltpu.PrefetchScalarGridSpec(
            num_scalar_prefetch=0,
            grid=grid,
            in_specs=in_specs,
            out_specs=pl.BlockSpec((tm, out_dim), lambda i: (i, 0)),
        ),
        compiler_params=pltpu.CompilerParams(
            dimension_semantics=("parallel",),
            vmem_limit_bytes=vmem_cap,
        ),
    )(x2d, wl2d, *weight_args)

    return out2d.reshape(B, T, out_dim)


def init_params(key, feature_dim, wl_dim, out_dim):
    """Deterministic init mimicking torch.nn.Linear (uniform +/- 1/sqrt(fan_in)).

    Weights stored transposed: (in, out). Each layer's weight is split into the
    x-part (first rows) and the weak-label part (last wl_dim rows), matching
    torch.cat([x, weak_labels], dim=2) ordering.
    """
    dims_in_x = [feature_dim, 128, 64, 32]
    dims_out = [128, 64, 32, out_dim]
    params = {}
    keys = jax.random.split(key, 4 * 3)
    for li, (din, dout) in enumerate(zip(dims_in_x, dims_out)):
        fan_in = din + wl_dim
        bound = 1.0 / np.sqrt(fan_in)
        kx, kw, kb = keys[3 * li: 3 * li + 3]
        params[f"w{li + 1}x"] = jax.random.uniform(
            kx, (din, dout), jnp.float32, -bound, bound)
        params[f"w{li + 1}w"] = jax.random.uniform(
            kw, (wl_dim, dout), jnp.float32, -bound, bound)
        params[f"b{li + 1}"] = jax.random.uniform(
            kb, (1, dout), jnp.float32, -bound, bound)
    return params


def reference_forward(features, weak_labels, params):
    """Pure-JAX reference with explicit concat (mirrors the torch code), f32."""
    x = features.astype(jnp.float32)
    wl = weak_labels.astype(jnp.float32)
    for li in range(1, 5):
        w = jnp.concatenate([params[f"w{li}x"], params[f"w{li}w"]], axis=0)
        cat = jnp.concatenate([x, wl], axis=2)
        x = jnp.einsum("btk,km->btm", cat, w) + params[f"b{li}"][0]
        if li < 4:
            x = jnp.maximum(x, 0.0)  # dropout is identity in eval
    return x


if __name__ == "__main__":
    # Small shapes consistent with the module's forward:
    # features (B, T, feature_dim), weak_labels (B, T, wl_dim)
    B, T = 2, 8
    feature_dim, wl_dim, out_dim = 32, 4, 8

    key = jax.random.PRNGKey(0)
    k_feat, k_wl, k_params, k_feat2, k_wl2, k_feat3, k_wl3 = jax.random.split(
        key, 7)

    features = jax.random.normal(k_feat, (B, T, feature_dim), jnp.float32)
    weak_labels = jax.random.normal(k_wl, (B, T, wl_dim), jnp.float32)
    params = init_params(k_params, feature_dim, wl_dim, out_dim)

    ref = jax.block_until_ready(
        reference_forward(features, weak_labels, params))

    # f32 compute path: tight match against the pure-JAX reference.
    out_f32 = jax.block_until_ready(frame_nn_skip_forward(
        features, weak_labels, params, compute_dtype=jnp.float32))
    np.testing.assert_allclose(np.asarray(out_f32), np.asarray(ref),
                               rtol=1e-5, atol=1e-5)

    # Default (bf16 operands, f32 MXU accumulation) fast path: loose match.
    out_bf16 = jax.block_until_ready(
        frame_nn_skip_forward(features, weak_labels, params))
    np.testing.assert_allclose(np.asarray(out_bf16).astype(np.float32),
                               np.asarray(ref), rtol=0.1, atol=0.1)

    # Ragged row count (exercises the cdiv grid / masked-tail path, no pad).
    B2, T2 = 3, 50
    features2 = jax.random.normal(k_feat2, (B2, T2, feature_dim), jnp.float32)
    weak_labels2 = jax.random.normal(k_wl2, (B2, T2, wl_dim), jnp.float32)
    out2 = jax.block_until_ready(frame_nn_skip_forward(
        features2, weak_labels2, params, compute_dtype=jnp.float32))
    ref2 = jax.block_until_ready(
        reference_forward(features2, weak_labels2, params))
    np.testing.assert_allclose(np.asarray(out2), np.asarray(ref2),
                               rtol=1e-5, atol=1e-5)

    # Larger N: exercises the multi-step "parallel" grid (tm=2048 tiles).
    B3, T3 = 4, 1024
    features3 = jax.random.normal(k_feat3, (B3, T3, feature_dim), jnp.float32)
    weak_labels3 = jax.random.normal(k_wl3, (B3, T3, wl_dim), jnp.float32)
    out3 = jax.block_until_ready(frame_nn_skip_forward(
        features3, weak_labels3, params, compute_dtype=jnp.float32))
    ref3 = jax.block_until_ready(
        reference_forward(features3, weak_labels3, params))
    np.testing.assert_allclose(np.asarray(out3), np.asarray(ref3),
                               rtol=1e-4, atol=1e-4)

    print("KERNEL_OK")
</pallas_src>

<mosaic_0001>
module attributes {stable_mosaic.version = 11 : i64} {
  func.func @_frame_nn_skip_kernel(%arg0: i32, %arg1: memref<16x32xf32, #tpu.memory_space<vmem>>, %arg2: memref<16x4xf32, #tpu.memory_space<vmem>>, %arg3: memref<32x128xf32, #tpu.memory_space<vmem>>, %arg4: memref<4x128xf32, #tpu.memory_space<vmem>>, %arg5: memref<1x128xf32, #tpu.memory_space<vmem>>, %arg6: memref<128x64xf32, #tpu.memory_space<vmem>>, %arg7: memref<4x64xf32, #tpu.memory_space<vmem>>, %arg8: memref<1x64xf32, #tpu.memory_space<vmem>>, %arg9: memref<64x32xf32, #tpu.memory_space<vmem>>, %arg10: memref<4x32xf32, #tpu.memory_space<vmem>>, %arg11: memref<1x32xf32, #tpu.memory_space<vmem>>, %arg12: memref<32x8xf32, #tpu.memory_space<vmem>>, %arg13: memref<4x8xf32, #tpu.memory_space<vmem>>, %arg14: memref<1x8xf32, #tpu.memory_space<vmem>>, %arg15: memref<16x8xf32, #tpu.memory_space<vmem>>) attributes {dimension_semantics = [#tpu.dimension_semantics<parallel>], iteration_bounds = array<i64: 1>, scalar_prefetch = 0 : i64, scratch_operands = 0 : i64, tpu.core_type = #tpu.core_type<tc>, window_params = [{transform_indices = @transform_0, window_bounds = array<i64: 16, 32>}, {transform_indices = @transform_1, window_bounds = array<i64: 16, 4>}, {pipeline_mode = #tpu.pipeline_mode<synchronous>, transform_indices = @transform_2, window_bounds = array<i64: 32, 128>}, {pipeline_mode = #tpu.pipeline_mode<synchronous>, transform_indices = @transform_3, window_bounds = array<i64: 4, 128>}, {pipeline_mode = #tpu.pipeline_mode<synchronous>, transform_indices = @transform_4, window_bounds = array<i64: 1, 128>}, {pipeline_mode = #tpu.pipeline_mode<synchronous>, transform_indices = @transform_5, window_bounds = array<i64: 128, 64>}, {pipeline_mode = #tpu.pipeline_mode<synchronous>, transform_indices = @transform_6, window_bounds = array<i64: 4, 64>}, {pipeline_mode = #tpu.pipeline_mode<synchronous>, transform_indices = @transform_7, window_bounds = array<i64: 1, 64>}, {pipeline_mode = #tpu.pipeline_mode<synchronous>, transform_indices = @transform_8, window_bounds = array<i64: 64, 32>}, {pipeline_mode = #tpu.pipeline_mode<synchronous>, transform_indices = @transform_9, window_bounds = array<i64: 4, 32>}, {pipeline_mode = #tpu.pipeline_mode<synchronous>, transform_indices = @transform_10, window_bounds = array<i64: 1, 32>}, {pipeline_mode = #tpu.pipeline_mode<synchronous>, transform_indices = @transform_11, window_bounds = array<i64: 32, 8>}, {pipeline_mode = #tpu.pipeline_mode<synchronous>, transform_indices = @transform_12, window_bounds = array<i64: 4, 8>}, {pipeline_mode = #tpu.pipeline_mode<synchronous>, transform_indices = @transform_13, window_bounds = array<i64: 1, 8>}, {transform_indices = @transform_14, window_bounds = array<i64: 16, 8>}]} {
    %c0 = arith.constant 0 : index
    %c0_0 = arith.constant 0 : index
    %0 = vector.load %arg1[%c0, %c0_0] : memref<16x32xf32, #tpu.memory_space<vmem>>, vector<16x32xf32>
    %c0_1 = arith.constant 0 : index
    %c0_2 = arith.constant 0 : index
    %1 = vector.load %arg2[%c0_1, %c0_2] : memref<16x4xf32, #tpu.memory_space<vmem>>, vector<16x4xf32>
    %c0_3 = arith.constant 0 : index
    %c0_4 = arith.constant 0 : index
    %2 = vector.load %arg3[%c0_3, %c0_4] : memref<32x128xf32, #tpu.memory_space<vmem>>, vector<32x128xf32>
    %cst = arith.constant dense<0.000000e+00> : vector<16x128xf32>
    %3 = tpu.matmul %0, %2, %cst {dimension_numbers = #tpu.dot_dimension_numbers<[1], [0], [0], [1], [0, 0, 1, 1], [], []>} : vector<16x32xf32>, vector<32x128xf32>, vector<16x128xf32> -> vector<16x128xf32>
    %c0_5 = arith.constant 0 : index
    %c0_6 = arith.constant 0 : index
    %4 = vector.load %arg4[%c0_5, %c0_6] : memref<4x128xf32, #tpu.memory_space<vmem>>, vector<4x128xf32>
    %cst_7 = arith.constant dense<0.000000e+00> : vector<16x128xf32>
    %5 = tpu.matmul %1, %4, %cst_7 {dimension_numbers = #tpu.dot_dimension_numbers<[1], [0], [0], [1], [0, 0, 1, 1], [], []>} : vector<16x4xf32>, vector<4x128xf32>, vector<16x128xf32> -> vector<16x128xf32>
    %6 = arith.addf %3, %5 : vector<16x128xf32>
    %c0_8 = arith.constant 0 : index
    %c0_9 = arith.constant 0 : index
    %7 = vector.load %arg5[%c0_8, %c0_9] : memref<1x128xf32, #tpu.memory_space<vmem>>, vector<1x128xf32>
    %8 = vector.broadcast %7 : vector<1x128xf32> to vector<16x128xf32>
    %9 = arith.addf %6, %8 : vector<16x128xf32>
    %cst_10 = arith.constant 0.000000e+00 : f32
    %10 = vector.broadcast %cst_10 : f32 to vector<16x128xf32>
    %11 = arith.maximumf %9, %10 : vector<16x128xf32>
    %c0_11 = arith.constant 0 : index
    %c0_12 = arith.constant 0 : index
    %12 = vector.load %arg6[%c0_11, %c0_12] : memref<128x64xf32, #tpu.memory_space<vmem>>, vector<128x64xf32>
    %cst_13 = arith.constant dense<0.000000e+00> : vector<16x64xf32>
    %13 = tpu.matmul %11, %12, %cst_13 {dimension_numbers = #tpu.dot_dimension_numbers<[1], [0], [0], [1], [0, 0, 1, 1], [], []>} : vector<16x128xf32>, vector<128x64xf32>, vector<16x64xf32> -> vector<16x64xf32>
    %c0_14 = arith.constant 0 : index
    %c0_15 = arith.constant 0 : index
    %14 = vector.load %arg7[%c0_14, %c0_15] : memref<4x64xf32, #tpu.memory_space<vmem>>, vector<4x64xf32>
    %cst_16 = arith.constant dense<0.000000e+00> : vector<16x64xf32>
    %15 = tpu.matmul %1, %14, %cst_16 {dimension_numbers = #tpu.dot_dimension_numbers<[1], [0], [0], [1], [0, 0, 1, 1], [], []>} : vector<16x4xf32>, vector<4x64xf32>, vector<16x64xf32> -> vector<16x64xf32>
    %16 = arith.addf %13, %15 : vector<16x64xf32>
    %c0_17 = arith.constant 0 : index
    %c0_18 = arith.constant 0 : index
    %17 = vector.load %arg8[%c0_17, %c0_18] : memref<1x64xf32, #tpu.memory_space<vmem>>, vector<1x64xf32>
    %18 = vector.broadcast %17 : vector<1x64xf32> to vector<16x64xf32>
    %19 = arith.addf %16, %18 : vector<16x64xf32>
    %cst_19 = arith.constant 0.000000e+00 : f32
    %20 = vector.broadcast %cst_19 : f32 to vector<16x64xf32>
    %21 = arith.maximumf %19, %20 : vector<16x64xf32>
    %c0_20 = arith.constant 0 : index
    %c0_21 = arith.constant 0 : index
    %22 = vector.load %arg9[%c0_20, %c0_21] : memref<64x32xf32, #tpu.memory_space<vmem>>, vector<64x32xf32>
    %cst_22 = arith.constant dense<0.000000e+00> : vector<16x32xf32>
    %23 = tpu.matmul %21, %22, %cst_22 {dimension_numbers = #tpu.dot_dimension_numbers<[1], [0], [0], [1], [0, 0, 1, 1], [], []>} : vector<16x64xf32>, vector<64x32xf32>, vector<16x32xf32> -> vector<16x32xf32>
    %c0_23 = arith.constant 0 : index
    %c0_24 = arith.constant 0 : index
    %24 = vector.load %arg10[%c0_23, %c0_24] : memref<4x32xf32, #tpu.memory_space<vmem>>, vector<4x32xf32>
    %cst_25 = arith.constant dense<0.000000e+00> : vector<16x32xf32>
    %25 = tpu.matmul %1, %24, %cst_25 {dimension_numbers = #tpu.dot_dimension_numbers<[1], [0], [0], [1], [0, 0, 1, 1], [], []>} : vector<16x4xf32>, vector<4x32xf32>, vector<16x32xf32> -> vector<16x32xf32>
    %26 = arith.addf %23, %25 : vector<16x32xf32>
    %c0_26 = arith.constant 0 : index
    %c0_27 = arith.constant 0 : index
    %27 = vector.load %arg11[%c0_26, %c0_27] : memref<1x32xf32, #tpu.memory_space<vmem>>, vector<1x32xf32>
    %28 = vector.broadcast %27 : vector<1x32xf32> to vector<16x32xf32>
    %29 = arith.addf %26, %28 : vector<16x32xf32>
    %cst_28 = arith.constant 0.000000e+00 : f32
    %30 = vector.broadcast %cst_28 : f32 to vector<16x32xf32>
    %31 = arith.maximumf %29, %30 : vector<16x32xf32>
    %c0_29 = arith.constant 0 : index
    %c0_30 = arith.constant 0 : index
    %32 = vector.load %arg12[%c0_29, %c0_30] : memref<32x8xf32, #tpu.memory_space<vmem>>, vector<32x8xf32>
    %cst_31 = arith.constant dense<0.000000e+00> : vector<16x8xf32>
    %33 = tpu.matmul %31, %32, %cst_31 {dimension_numbers = #tpu.dot_dimension_numbers<[1], [0], [0], [1], [0, 0, 1, 1], [], []>} : vector<16x32xf32>, vector<32x8xf32>, vector<16x8xf32> -> vector<16x8xf32>
    %c0_32 = arith.constant 0 : index
    %c0_33 = arith.constant 0 : index
    %34 = vector.load %arg13[%c0_32, %c0_33] : memref<4x8xf32, #tpu.memory_space<vmem>>, vector<4x8xf32>
    %cst_34 = arith.constant dense<0.000000e+00> : vector<16x8xf32>
    %35 = tpu.matmul %1, %34, %cst_34 {dimension_numbers = #tpu.dot_dimension_numbers<[1], [0], [0], [1], [0, 0, 1, 1], [], []>} : vector<16x4xf32>, vector<4x8xf32>, vector<16x8xf32> -> vector<16x8xf32>
    %36 = arith.addf %33, %35 : vector<16x8xf32>
    %c0_35 = arith.constant 0 : index
    %c0_36 = arith.constant 0 : index
    %37 = vector.load %arg14[%c0_35, %c0_36] : memref<1x8xf32, #tpu.memory_space<vmem>>, vector<1x8xf32>
    %38 = vector.broadcast %37 : vector<1x8xf32> to vector<16x8xf32>
    %39 = arith.addf %36, %38 : vector<16x8xf32>
    %c0_37 = arith.constant 0 : index
    %c0_38 = arith.constant 0 : index
    %40 = vector.load %arg15[%c0_37, %c0_38] : memref<16x8xf32, #tpu.memory_space<vmem>>, vector<16x8xf32>
    tpu.vector_store %arg15[%c0_37, %c0_38], %39 {strides = array<i32>} : memref<16x8xf32, #tpu.memory_space<vmem>>, vector<16x8xf32>,
    return
  }
  func.func @transform_0(%arg0: i32) -> (i32, i32) {
    %c0_i32 = arith.constant 0 : i32
    %c0_i32_0 = arith.constant 0 : i32
    return %arg0, %c0_i32 : i32, i32
  }
  func.func @transform_1(%arg0: i32) -> (i32, i32) {
    %c0_i32 = arith.constant 0 : i32
    %c0_i32_0 = arith.constant 0 : i32
    return %arg0, %c0_i32 : i32, i32
  }
  func.func @transform_2(%arg0: i32) -> (i32, i32) {
    %c0_i32 = arith.constant 0 : i32
    %c0_i32_0 = arith.constant 0 : i32
    %c0_i32_1 = arith.constant 0 : i32
    return %c0_i32, %c0_i32_0 : i32, i32
  }
  func.func @transform_3(%arg0: i32) -> (i32, i32) {
    %c0_i32 = arith.constant 0 : i32
    %c0_i32_0 = arith.constant 0 : i32
    %c0_i32_1 = arith.constant 0 : i32
    return %c0_i32, %c0_i32_0 : i32, i32
  }
  func.func @transform_4(%arg0: i32) -> (i32, i32) {
    %c0_i32 = arith.constant 0 : i32
    %c0_i32_0 = arith.constant 0 : i32
    %c0_i32_1 = arith.constant 0 : i32
    return %c0_i32, %c0_i32_0 : i32, i32
  }
  func.func @transform_5(%arg0: i32) -> (i32, i32) {
    %c0_i32 = arith.constant 0 : i32
    %c0_i32_0 = arith.constant 0 : i32
    %c0_i32_1 = arith.constant 0 : i32
    return %c0_i32, %c0_i32_0 : i32, i32
  }
  func.func @transform_6(%arg0: i32) -> (i32, i32) {
    %c0_i32 = arith.constant 0 : i32
    %c0_i32_0 = arith.constant 0 : i32
    %c0_i32_1 = arith.constant 0 : i32
    return %c0_i32, %c0_i32_0 : i32, i32
  }
  func.func @transform_7(%arg0: i32) -> (i32, i32) {
    %c0_i32 = arith.constant 0 : i32
    %c0_i32_0 = arith.constant 0 : i32
    %c0_i32_1 = arith.constant 0 : i32
    return %c0_i32, %c0_i32_0 : i32, i32
  }
  func.func @transform_8(%arg0: i32) -> (i32, i32) {
    %c0_i32 = arith.constant 0 : i32
    %c0_i32_0 = arith.constant 0 : i32
    %c0_i32_1 = arith.constant 0 : i32
    return %c0_i32, %c0_i32_0 : i32, i32
  }
  func.func @transform_9(%arg0: i32) -> (i32, i32) {
    %c0_i32 = arith.constant 0 : i32
    %c0_i32_0 = arith.constant 0 : i32
    %c0_i32_1 = arith.constant 0 : i32
    return %c0_i32, %c0_i32_0 : i32, i32
  }
  func.func @transform_10(%arg0: i32) -> (i32, i32) {
    %c0_i32 = arith.constant 0 : i32
    %c0_i32_0 = arith.constant 0 : i32
    %c0_i32_1 = arith.constant 0 : i32
    return %c0_i32, %c0_i32_0 : i32, i32
  }
  func.func @transform_11(%arg0: i32) -> (i32, i32) {
    %c0_i32 = arith.constant 0 : i32
    %c0_i32_0 = arith.constant 0 : i32
    %c0_i32_1 = arith.constant 0 : i32
    return %c0_i32, %c0_i32_0 : i32, i32
  }
  func.func @transform_12(%arg0: i32) -> (i32, i32) {
    %c0_i32 = arith.constant 0 : i32
    %c0_i32_0 = arith.constant 0 : i32
    %c0_i32_1 = arith.constant 0 : i32
    return %c0_i32, %c0_i32_0 : i32, i32
  }
  func.func @transform_13(%arg0: i32) -> (i32, i32) {
    %c0_i32 = arith.constant 0 : i32
    %c0_i32_0 = arith.constant 0 : i32
    %c0_i32_1 = arith.constant 0 : i32
    return %c0_i32, %c0_i32_0 : i32, i32
  }
  func.func @transform_14(%arg0: i32) -> (i32, i32) {
    %c0_i32 = arith.constant 0 : i32
    %c0_i32_0 = arith.constant 0 : i32
    return %arg0, %c0_i32 : i32, i32
  }
}

</mosaic_0001>

<bundles_post_ra>
// kernel: tpu_custom_call.1
= control target key start
LH: loop header
LB: loop body
LE: loop exit
PB: predicated region body
PF: predicated region fallthrough
CT: control target
= control target key end

     0   :  { %vm63_vm0 = vcmask 1043456   ;;  %vm56_vm1 = vcmask 31744   ;;  %vm90_vm2 = vcmask 261120   ;;  %vm237_vm3 = vcmask 523264   ;;  %s613_s2 = inlined_call_operand.vmem [shape: f32[32,128], index: 2, kind: input, shape index: {}]   ;;  %s614_s3 = inlined_call_operand.vmem [shape: f32[4,128], index: 3, kind: input, shape index: {}]   ;;  %s615_s1 = inlined_call_operand.vmem [shape: f32[16,4], index: 1, kind: input, shape index: {}]   ;;  %s616_s5 = inlined_call_operand.vmem [shape: f32[128,64], index: 5, kind: input, shape index: {}]   ;;  %s617_s0 = inlined_call_operand.vmem [shape: f32[16,32], index: 0, kind: input, shape index: {}]   ;;  %s618_s6 = inlined_call_operand.vmem [shape: f32[4,64], index: 6, kind: input, shape index: {}]   ;;  %s619_s4 = inlined_call_operand.vmem [shape: f32[1,128], index: 4, kind: input, shape index: {}]   ;;  %s620_s7 = inlined_call_operand.vmem [shape: f32[1,64], index: 7, kind: input, shape index: {}]   ;;  %s621_s8 = inlined_call_operand.vmem [shape: f32[64,32], index: 8, kind: input, shape index: {}]   ;;  %s622_s9 = inlined_call_operand.vmem [shape: f32[4,32], index: 9, kind: input, shape index: {}]   ;;  %s623_s10 = inlined_call_operand.vmem [shape: f32[1,32], index: 10, kind: input, shape index: {}]   ;;  %s624_s12 = inlined_call_operand.vmem [shape: f32[4,8], index: 12, kind: input, shape index: {}]   ;;  %s625_s11 = inlined_call_operand.vmem [shape: f32[32,8], index: 11, kind: input, shape index: {}]   ;;  %s626_s13 = inlined_call_operand.vmem [shape: f32[1,8], index: 13, kind: input, shape index: {}]   ;;  %s627_s14 = inlined_call_operand.vmem [shape: f32[16,8], index: 14, kind: output, shape index: {}]  }
   0x1   :  { %v54_v0 = vld [vmem:[%s613_s2 + $0x18] sm:$0xff]  ;;  %v53_v1 = vld [vmem:[%s613_s2 + $0x10] sm:$0xff]  ;;  %v55_v2 = vld [vmem:[%s614_s3] sm:$0xf]  ;;  %vm341_vm4 = vcmask 64512  }
   0x2   :  { %109 = vmatpush.msra.mxu1 %v54_v0  ;;  %v458_v3 = vld [vmem:[%s615_s1] sm:$0xff]  ;;  %v52_v4 = vld [vmem:[%s613_s2 + $0x8] sm:$0xff]  ;;  %348 = vmatpush.msk.msra.mxu0 %vm63_vm0, %v55_v2  ;;  %v143_v6 = vld [vmem:[%s616_s5 + $0x78] sm:$0xff] }
   0x3   :  { %366 = vmatpush.msk.msra.mxu2 %vm63_vm0, %v55_v2  ;;  %v468_v5 = vld [vmem:[%s615_s1 + $0x8] sm:$0xff]  ;;  %349 = vmatmul.msk.f32.vlgmr.msra.gmra.mxu0 %vm56_vm1, %v458_v3  ;;  %v142_v7 = vld [vmem:[%s616_s5 + $0x70] sm:$0xff]  ;;  %v51_v8 = vld [vmem:[%s613_s2] sm:$0xff] }
   0x4   :  { %110 = vmatpush.msra.mxu1 %v53_v1  ;;  %350 = vmatmul.msk.f32.vlgmr.msra.gmra.mxu2 %vm56_vm1, %v468_v5  ;;  %v47_v9 = vld [vmem:[%s617_s0] sm:$0xff]  ;;  %v141_v10 = vld [vmem:[%s616_s5 + $0x68] sm:$0xff]  ;;  %v139_v13 = vld [vmem:[%s616_s5 + $0x58] sm:$0xff] }
   0x5   :  { %171 = vmatpush.msra.mxu3 %v143_v6  ;;  %v140_v11 = vld [vmem:[%s616_s5 + $0x60] sm:$0xff]  ;;  %v138_v14 = vld [vmem:[%s616_s5 + $0x50] sm:$0xff]  ;;  %v48_v15 = vld [vmem:[%s617_s0 + $0x8] sm:$0xff] }
   0x6   :  { %111 = vmatpush.msra.mxu1 %v52_v4  ;;  %v144_v12 = vld [vmem:[%s618_s6] sm:$0xf]  ;;  %v137_v16 = vld [vmem:[%s616_s5 + $0x48] sm:$0xff]  ;;  %v135_v18 = vld [vmem:[%s616_s5 + $0x38] sm:$0xff] }
   0x7   :  { %172 = vmatpush.msra.mxu3 %v142_v7  ;;  %353 = vmatpush.msk.msrb.mxu2 %vm63_vm0, %v144_v12  ;;  %v136_v17 = vld [vmem:[%s616_s5 + $0x40] sm:$0xff]  ;;  %v134_v19 = vld [vmem:[%s616_s5 + $0x30] sm:$0xff]  ;;  %v133_v20 = vld [vmem:[%s616_s5 + $0x28] sm:$0xff] }
   0x8   :  { %112 = vmatpush.msra.mxu1 %v51_v8  ;;  %v132_v21 = vld [vmem:[%s616_s5 + $0x20] sm:$0xff]  ;;  %v131_v22 = vld [vmem:[%s616_s5 + $0x18] sm:$0xff]  ;;  %v130_v23 = vld [vmem:[%s616_s5 + $0x10] sm:$0xff] }
   0x9   :  { %351 = vmatmul.msk.f32.vlgmr.msra.gmra.mxu1 %vm90_vm2, %v47_v9  ;;  %173 = vmatpush.msra.mxu3 %v141_v10  ;;  %v129_v24 = vld [vmem:[%s616_s5 + $0x8] sm:$0xff]  ;;  %v128_v25 = vld [vmem:[%s616_s5] sm:$0xff]  ;;  %v209_v26 = vld [vmem:[%s621_s8 + $0x38] sm:$0xff] }
   0xa   :  { %v208_v27 = vld [vmem:[%s621_s8 + $0x30] sm:$0xff]  ;;  %252 = vmatpush.msra.mxu2 %v209_v26  ;;  %v207_v28 = vld [vmem:[%s621_s8 + $0x28] sm:$0xff]  ;;  %v206_v29 = vld [vmem:[%s621_s8 + $0x20] sm:$0xff] }
   0xb   :  { %174 = vmatpush.msra.mxu3 %v140_v11  ;;  %v205_v30 = vld [vmem:[%s621_s8 + $0x18] sm:$0xff]  ;;  %v367_v32 = vld [vmem:[%s619_s4] ss:$0 sm:$0xff]  ;;  %v204_v42 = vld [vmem:[%s621_s8 + $0x10] sm:$0xff] }
   0xc   :  { %354 = vmatmul.msk.f32.vlgmr.msrb.gmra.mxu2 %vm56_vm1, %v458_v3  ;;  %v203_v43 = vld [vmem:[%s621_s8 + $0x8] sm:$0xff]  ;;  %v210_v44 = vld [vmem:[%s622_s9] sm:$0xf]  ;;  %v278_v47 = vld [vmem:[%s625_s11 + $0x18] sm:$0xff] }
   0xd   :  { %175 = vmatpush.msra.mxu3 %v139_v13  ;;  %253 = vmatpush.msra.mxu2 %v208_v27  ;;  %v202_v45 = vld [vmem:[%s621_s8] sm:$0xff]  ;;  %v277_v48 = vld [vmem:[%s625_s11 + $0x10] sm:$0xff]  ;;  %v276_v49 = vld [vmem:[%s625_s11 + $0x8] sm:$0xff] }
   0xe   :  { %356 = vmatpush.msk.msrb.mxu0 %vm63_vm0, %v210_v44  ;;  %v279_v46 = vld [vmem:[%s624_s12] sm:$0xf] }
   0xf   :  { %176 = vmatpush.msra.mxu3 %v138_v14  ;;  %254 = vmatpush.msra.mxu2 %v207_v28  ;;  %v368_v51 = vld [vmem:[%s620_s7] ss:$0 sm:$0xff] }
  0x10   :  { %357 = vmatmul.msk.f32.vlgmr.msrb.gmra.mxu0 %vm56_vm1, %v458_v3  ;;  %361 = vmatpush.msk.msrb.mxu1 %vm63_vm0, %v279_v46  ;;  %v275_v61 = vld [vmem:[%s625_s11] sm:$0xff] }
  0x11   :  { %352 = vmatmul.msk.f32.gmra.mxu1 %vm90_vm2, %v48_v15  ;;  %177 = vmatpush.msra.mxu3 %v137_v16  ;;  %v369_v63 = vld [vmem:[%s623_s10] ss:$0 sm:$0xff] }
  0x12   :  { %255 = vmatpush.msra.mxu2 %v206_v29  ;;  %324 = vmatpush.msra.mxu0 %v278_v47  ;;  %v370_v10 = vld [vmem:[%s626_s13] ss:$0 sm:$0xff] }
  0x13   :  { %178 = vmatpush.msra.mxu3 %v136_v17 }
  0x14   :  { %355 = vmatmul.msk.f32.gmra.mxu2 %vm56_vm1, %v468_v5  ;;  %325 = vmatpush.msra.mxu0 %v277_v48 }
  0x15   :  { %179 = vmatpush.msra.mxu3 %v135_v18  ;;  %256 = vmatpush.msra.mxu2 %v205_v30 }
  0x16   :  { %326 = vmatpush.msra.mxu0 %v276_v49 }
  0x17   :  { %180 = vmatpush.msra.mxu3 %v134_v19  ;;  %257 = vmatpush.msra.mxu2 %v204_v42 }
  0x18   :  { %358 = vmatmul.msk.f32.gmra.mxu0 %vm56_vm1, %v468_v5 }
  0x19   :  { %181 = vmatpush.msra.mxu3 %v133_v20  ;;  %258 = vmatpush.msra.mxu2 %v203_v43 }
  0x1a   :  { %362 = vmatmul.msk.f32.vlgmr.msrb.gmra.mxu1 %vm56_vm1, %v458_v3  ;;  %327 = vmatpush.msra.mxu0 %v275_v61 }
  0x1b   :  { %182 = vmatpush.msra.mxu3 %v132_v21  ;;  %259 = vmatpush.msra.mxu2 %v202_v45 }
  0x1d   :  { %183 = vmatpush.msra.mxu3 %v131_v22 }
  0x1f   :  { %184 = vmatpush.msra.mxu3 %v130_v23 }
  0x21   :  { %185 = vmatpush.msra.mxu3 %v129_v24 }
  0x22   :  { %363 = vmatmul.msk.f32.gmra.mxu1 %vm56_vm1, %v468_v5 }
  0x23   :  { %186 = vmatpush.msra.mxu3 %v128_v25 }
  0x80   :  { %v84_v31 = vpop.f32.mrf.mxu0 }
  0x86   :  { %v114_v33 = vpop.f32.mrf.mxu1 }
  0x87   :  { %v115_v34 = vadd.f32 %v114_v33, %v84_v31  ;;  %v87_v37 = vpop.f32.mrf.mxu2 }
  0x89   :  { %v124_v35 = vadd.f32 %v367_v32, %v115_v34 }
  0x8b   :  { %v126_v36 = vmax.f32 %v124_v35, 0.0 }
  0x8d   :  { %187 = vmatmul.f32.vlgmr.msra.gmra.mxu3 %v126_v36  ;;  %v231_v62 = vpop.f32.mrf.mxu0 }
  0x8e   :  { %v117_v38 = vpop.f32.mrf.mxu1 }
  0x8f   :  { %v118_v39 = vadd.f32 %v117_v38, %v87_v37  ;;  %v165_v50 = vpop.f32.mrf.mxu2 }
  0x91   :  { %v125_v40 = vadd.f32 %v367_v32, %v118_v39 }
  0x93   :  { %v127_v41 = vmax.f32 %v125_v40, 0.0 }
  0x95   :  { %190 = vmatmul.f32.gmra.mxu3 %v127_v41  ;;  %v234_v4 = vpop.f32.mrf.mxu0 }
  0x97   :  { %v168_v56 = vpop.f32.mrf.mxu2  ;;  %v300_v9 = vpop.f32.mrf.mxu1 }
  0x9f   :  { %v303_v14 = vpop.f32.mrf.mxu1 }
 0x110   :  { %v188_v52 = vpop.f32.mrf.mxu3 }
 0x111   :  { %v189_v53 = vadd.f32 %v188_v52, %v165_v50 }
 0x113   :  { %v198_v54 = vadd.f32 %v368_v51, %v189_v53 }
 0x115   :  { %v200_v55 = vmax.f32 %v198_v54, 0.0 }
 0x117   :  { %359 = vmatmul.msk.f32.vlgmr.msra.gmra.mxu2 %vm237_vm3, %v200_v55 }
 0x118   :  { %v191_v57 = vpop.f32.mrf.mxu3 }
 0x119   :  { %v192_v58 = vadd.f32 %v191_v57, %v168_v56 }
 0x11b   :  { %v199_v59 = vadd.f32 %v368_v51, %v192_v58 }
 0x11d   :  { %v201_v60 = vmax.f32 %v199_v59, 0.0 }
 0x11f   :  { %360 = vmatmul.msk.f32.gmra.mxu2 %vm237_vm3, %v201_v60 }
 0x19a   :  { %v261_v0 = vpop.f32.mrf.mxu2 }
 0x19b   :  { %v262_v1 = vadd.f32 %v261_v0, %v231_v62 }
 0x19d   :  { %v271_v2 = vadd.f32 %v369_v63, %v262_v1 }
 0x19f   :  { %v273_v3 = vmax.f32 %v271_v2, 0.0 }
 0x1a1   :  { %364 = vmatmul.msk.f32.vlgmr.msra.gmra.mxu0 %vm90_vm2, %v273_v3 }
 0x1a2   :  { %v264_v5 = vpop.f32.mrf.mxu2 }
 0x1a3   :  { %v265_v6 = vadd.f32 %v264_v5, %v234_v4 }
 0x1a5   :  { %v272_v7 = vadd.f32 %v369_v63, %v265_v6 }
 0x1a7   :  { %v274_v8 = vmax.f32 %v272_v7, 0.0 }
 0x1a9   :  { %365 = vmatmul.msk.f32.gmra.mxu0 %vm90_vm2, %v274_v8 }
 0x21e   :  { %v329_v11 = vpop.f32.mrf.mxu0 }
 0x21f   :  { %v330_v12 = vadd.f32 %v329_v11, %v300_v9 }
 0x221   :  { %v339_v13 = vadd.f32 %v370_v10, %v330_v12 }
 0x223   :  { %342 = vst.msk [vmem:[%s627_s14] sm:$0xff] %vm341_vm4, %v339_v13 }
 0x226   :  { %v332_v15 = vpop.f32.mrf.mxu0 }
 0x227   :  { %v333_v16 = vadd.f32 %v332_v15, %v303_v14 }
 0x229   :  { %v340_v17 = vadd.f32 %v370_v10, %v333_v16 }
 0x22b   :  { %343 = vst.msk [vmem:[%s627_s14 + $0x8] sm:$0xff] %vm341_vm4, %v340_v17 }

</bundles_post_ra>
